<compile_context>
chip_gen: v5e
topology: v5e:2x2
jax: 0.10.0
libtpu: 0.0.40
codegen_flags: <defaults>
</compile_context>

<pallas_src>
import functools

import numpy as np
import jax
import jax.numpy as jnp
from jax.experimental import pallas as pl
from jax.experimental.pallas import tpu as pltpu

F32 = jnp.float32

TN = 512          # node tile (lane axis) for the load / soln kernels
TT = 512          # triangle tile (lane axis) for the stiffness kernel
COEF_LANES = 128  # coefficient / soln-output lane width (unmasked stores)


# ----------------------------------------------------------------------------
# Static mesh structure (stands in for firedrake UnitSquareMesh + CG1 maps).
# ----------------------------------------------------------------------------
def build_unit_square_mesh(n):
    """n x n nodes, node id = iy*n + ix, two triangles per quad cell."""
    xs = np.linspace(0.0, 1.0, n)
    coords = np.stack(np.meshgrid(xs, xs, indexing="xy"), axis=-1).reshape(-1, 2)
    cells = []
    for iy in range(n - 1):
        for ix in range(n - 1):
            v00 = iy * n + ix
            v10 = iy * n + ix + 1
            v01 = (iy + 1) * n + ix
            v11 = (iy + 1) * n + ix + 1
            cells.append([v00, v10, v11])
            cells.append([v00, v11, v01])
    cells = np.array(cells, dtype=np.int32)
    bc = np.array(
        [iy * n + ix for iy in range(n) for ix in range(n)
         if ix == 0 or iy == 0 or ix == n - 1 or iy == n - 1],
        dtype=np.int32)
    return coords.astype(np.float32), cells, bc


def node_incidence(cells, num_nodes):
    """Per-node (a, b, c) vertex indices of every incident triangle (padded)."""
    ent = [[] for _ in range(num_nodes)]
    for cell_idx in range(cells.shape[0]):
        for local in range(3):
            m = int(cells[cell_idx, local])
            c_i = cells[cell_idx, local]
            a_i = cells[cell_idx, (local - 1) % 3]   # torch.fmod + negative index
            b_i = cells[cell_idx, (local - 2) % 3]   # == python modulo here
            ent[m].append((a_i, b_i, c_i, cell_idx))
    kmax = max(len(e) for e in ent)
    a_idx = np.zeros((num_nodes, kmax), np.int32)
    b_idx = np.zeros((num_nodes, kmax), np.int32)
    c_idx = np.zeros((num_nodes, kmax), np.int32)
    mask = np.zeros((num_nodes, kmax), np.float32)
    sup_cells = np.zeros((num_nodes, kmax), np.int32)
    for m in range(num_nodes):
        for k, (ai, bi, ci, cell) in enumerate(ent[m]):
            a_idx[m, k], b_idx[m, k], c_idx[m, k] = ai, bi, ci
            mask[m, k] = 1.0
            sup_cells[m, k] = cell
        for k in range(len(ent[m]), kmax):
            sup_cells[m, k] = ent[m][0][3]   # pad with a real cell (min/max unaffected)
    return a_idx, b_idx, c_idx, mask, sup_cells, kmax


def simpson_weights(q):
    assert q % 2 == 1 and q >= 3
    w = np.ones(q, np.float64)
    w[1:-1:2] = 4.0
    w[2:-1:2] = 2.0
    return (w / 3.0).astype(np.float32)


# ----------------------------------------------------------------------------
# In-kernel helper: phi_m(x) for a tile of nodes m (lanes) at points x
# (sublanes).  x0/x1 must already be full (P, TN) arrays (broadcasts hoisted).
# coord_ref is a packed (8*kmax, TN) slab; per slot k (offset 8*k) the rows are
#   0:a0 1:a1 2:b0 3:b1 4:c0 5:c1 6:mask 7:pad.
# ----------------------------------------------------------------------------
def _phim_tile(x0, x1, coord_ref, kmax):
    outp = jnp.zeros_like(x0)
    rep = jnp.zeros_like(x0)
    for k in range(kmax):                                   # static, fully unrolled
        base = 8 * k
        a0 = coord_ref[base + 0:base + 1, :]
        a1 = coord_ref[base + 1:base + 2, :]
        b0 = coord_ref[base + 2:base + 3, :]
        b1 = coord_ref[base + 3:base + 4, :]
        c0 = coord_ref[base + 4:base + 5, :]
        c1 = coord_ref[base + 5:base + 6, :]
        mk = coord_ref[base + 6:base + 7, :]

        # edge coefficients (1, TN); reused for lhs, rhs and the denominator
        dab, eab = a1 - b1, b0 - a0
        dbc, ebc = b1 - c1, c0 - b0
        dca, eca = c1 - a1, a0 - c0
        r_ab = dab * a0 + eab * a1
        r_bc = dbc * b0 + ebc * b1
        r_ca = dca * c0 + eca * c1
        l_ab = dab * x0 + eab * x1                          # (P, TN)
        l_bc = dbc * x0 + ebc * x1
        l_ca = dca * x0 + eca * x1

        left = (l_ab >= r_ab) & (l_bc >= r_bc) & (l_ca >= r_ca)
        right = (l_ab <= r_ab) & (l_bc <= r_bc) & (l_ca <= r_ca)
        inside = left | right                               # bool (P, TN)

        denom = dca * eab - dab * eca                       # (1, TN), x-independent
        denom = jnp.where(mk > 0.0, denom, 1.0)             # mask-driven guard
        inv_den = 1.0 / denom                               # exact (accuracy path)
        bary = 1.0 + ((x0 - c0) * dab + (x1 - c1) * eab) * inv_den

        ind = jnp.where(inside & (bary > 0.0), mk, 0.0)     # masked indicator
        outp = outp + ind * bary
        rep = rep + ind
    return outp / (rep + (rep == 0.0).astype(F32))          # exact division


# ----------------------------------------------------------------------------
# Kernel 1: per-triangle stiffness entries (build_mass_matrix hot path).
#   packed input  (8, TT): rows xi,xj,xk,yi,yj,yk,(pad,pad)
#   packed output (8, TT): rows Mii,Mjj,Mkk,Mij,Mjk,Mki (rows 6,7 untouched)
# ----------------------------------------------------------------------------
def _stiffness_kernel(xy_ref, out_ref):
    xi, xj, xk = xy_ref[0:1, :], xy_ref[1:2, :], xy_ref[2:3, :]
    yi, yj, yk = xy_ref[3:4, :], xy_ref[4:5, :], xy_ref[5:6, :]
    det = (xj - xi) * (yk - yi) - (xk - xi) * (yj - yi)
    inv = 0.5 / jnp.abs(det)              # area / det^2 folded into one divide
    gi0, gi1 = yj - yk, xk - xj           # hat-gradient numerators (grad * det)
    gj0, gj1 = yk - yi, xi - xk
    gk0, gk1 = yi - yj, xj - xi
    out_ref[0:1, :] = (gi0 * gi0 + gi1 * gi1) * inv
    out_ref[1:2, :] = (gj0 * gj0 + gj1 * gj1) * inv
    out_ref[2:3, :] = (gk0 * gk0 + gk1 * gk1) * inv
    out_ref[3:4, :] = (gi0 * gj0 + gi1 * gj1) * inv
    out_ref[4:5, :] = (gj0 * gk0 + gj1 * gk1) * inv
    out_ref[5:6, :] = (gk0 * gi0 + gk1 * gi1) * inv


# ----------------------------------------------------------------------------
# Kernel 2: load-vector cubature (build_load_vector hot path).
#   One node tile per grid step; quadrature points/weights generated in-kernel
#   from the per-node support bounding box; lane-dense (1, TN) direct store.
# ----------------------------------------------------------------------------
def _load_kernel(gauss_ref, quad_ref, bbox_ref, coord_ref, out_ref,
                 *, kmax, num_gauss):
    lo0, hi0 = bbox_ref[0:1, :], bbox_ref[1:2, :]          # (1, TN)
    lo1, hi1 = bbox_ref[2:3, :], bbox_ref[3:4, :]
    dx = hi0 - lo0
    dy = hi1 - lo1

    tx = quad_ref[:, 0:1]                                  # (QQpad, 1)
    ty = quad_ref[:, 1:2]
    wq = quad_ref[:, 2:3]                                  # w1[iy]*w1[ix]/(Qr-1)^2

    x0 = lo0 + dx * tx                                     # (QQpad, TN)
    x1 = lo1 + dy * ty
    w = wq * (dx * dy)                                     # composite Simpson weights

    phimv = _phim_tile(x0, x1, coord_ref, kmax)

    # Gaussian source parameters: 4G SMEM scalars, read once (hoisted).
    fv = jnp.zeros_like(x0)
    for g in range(num_gauss):                             # static, unrolled
        c0g = gauss_ref[2 * g]
        c1g = gauss_ref[2 * g + 1]
        s0g = gauss_ref[2 * num_gauss + 2 * g]
        s1g = gauss_ref[2 * num_gauss + 2 * g + 1]
        inv_s0sq = 1.0 / (s0g * s0g)                       # scalar-unit reciprocals
        inv_s1sq = 1.0 / (s1g * s1g)
        coef = 1.0 / (s0g ** 4 * s1g ** 4)
        d0 = c0g - x0
        fv = fv + coef * jnp.exp(
            -(d0 * d0) * inv_s0sq - ((c1g - x1) ** 2) * inv_s1sq) * (
            4.0 * c1g ** 2 * s0g ** 4 - 2.0 * s0g ** 2 * s1g ** 4
            + 4.0 * s1g ** 4 * d0 * d0 - 8.0 * c1g * s0g ** 4 * x1
            - 2.0 * s0g ** 4 * (s1g ** 2 - 2.0 * x1 * x1))

    # Simpson reduction over the quadrature (sublane) axis -> (1, TN) per node.
    out_ref[...] = jnp.sum(phimv * fv * w, axis=0, keepdims=True)


# ----------------------------------------------------------------------------
# Kernel 3: FEM solution on the eval grid (soln hot path).
#   grid = (eval tiles ["parallel"], node tiles ["arbitrary"]); per eval tile a
#   resident (TE, 128) accumulator, contracted on the MXU against a 128-lane
#   coefficient operand (column 0 holds the result).
# ----------------------------------------------------------------------------
def _soln_kernel(coef_ref, ex_ref, coord_ref, out_ref, *, kmax, tn):
    @pl.when(pl.program_id(1) == 0)
    def _init():
        out_ref[...] = jnp.zeros_like(out_ref)

    te = ex_ref.shape[0]
    # hoist the point broadcasts once (JAX does not CSE broadcast_in_dim)
    x0 = jnp.broadcast_to(ex_ref[:, 0:1], (te, tn))
    x1 = jnp.broadcast_to(ex_ref[:, 1:2], (te, tn))
    phimv = _phim_tile(x0, x1, coord_ref, kmax)            # (TE, TN)
    out_ref[...] += jnp.dot(phimv, coef_ref[...],
                            preferred_element_type=jnp.float32)  # (TE, 128)


# ----------------------------------------------------------------------------
# Wrapper (forward pass).
# ----------------------------------------------------------------------------
def _pad_cols(x, width, value=0.0):
    pad = width - x.shape[-1]
    if pad == 0:
        return x
    return jnp.pad(x, ((0, 0), (0, pad)), constant_values=value)


def fixed_mesh_2d_forward(mesh_points, centers, scales, opt, mesh_static,
                          loss_type="pde_loss"):
    if loss_type == "mesh_loss":
        return mesh_points

    coords0, cells, bc_nodes, a_idx, b_idx, c_idx, inc_mask, sup_cells, kmax = mesh_static
    N = mesh_points.shape[0]
    T = cells.shape[0]
    G = centers.shape[0]
    gauss_params = jnp.concatenate(
        [centers.reshape(-1).astype(F32), scales.reshape(-1).astype(F32)])   # (4G,)

    Npad = pl.cdiv(N, TN) * TN
    Tpad = pl.cdiv(T, TT) * TT
    cparams = functools.partial(pltpu.CompilerParams,
                                vmem_limit_bytes=32 * 1024 * 1024)

    # ---- 1) stiffness ("mass") matrix --------------------------------------
    tri_xy = mesh_points[cells]                          # (T, 3, 2)
    packed = jnp.concatenate(
        [tri_xy[:, :, 0].T, tri_xy[:, :, 1].T, jnp.zeros((2, T), F32)], axis=0)
    if Tpad > T:                                         # pad with unit triangles
        dummy = jnp.asarray([0., 1., 0., 0., 0., 1., 0., 0.], F32)[:, None]
        packed = jnp.concatenate(
            [packed, jnp.broadcast_to(dummy, (8, Tpad - T))], axis=1)

    m_out = pl.pallas_call(
        _stiffness_kernel,
        out_shape=jax.ShapeDtypeStruct((8, Tpad), F32),
        grid=(Tpad // TT,),
        in_specs=[pl.BlockSpec((8, TT), lambda i: (0, i))],
        out_specs=pl.BlockSpec((8, TT), lambda i: (0, i)),
        compiler_params=cparams(dimension_semantics=("parallel",)),
    )(packed)
    mii, mjj, mkk, mij, mjk, mki = (m_out[r, :T] for r in range(6))

    i_idx, j_idx, k_idx = cells[:, 0], cells[:, 1], cells[:, 2]
    rows = np.concatenate([i_idx, j_idx, k_idx, i_idx, j_idx, k_idx, j_idx, k_idx, i_idx])
    cols = np.concatenate([i_idx, j_idx, k_idx, j_idx, k_idx, i_idx, i_idx, j_idx, k_idx])
    vals = jnp.concatenate([mii, mjj, mkk, mij, mjk, mki, mij, mjk, mki])
    A = -(jnp.zeros((N, N), F32).at[rows, cols].add(vals))
    A = A.at[bc_nodes, :].set(0.0)
    A = A.at[bc_nodes, bc_nodes].set(1.0)

    # ---- packed per-node incidence coordinates (shared by load & soln) -----
    A_xy = mesh_points[a_idx]                            # (N, kmax, 2)
    B_xy = mesh_points[b_idx]
    C_xy = mesh_points[c_idx]
    coord_packed = jnp.zeros((kmax, 8, N), F32)
    coord_packed = coord_packed.at[:, 0, :].set(A_xy[..., 0].T)
    coord_packed = coord_packed.at[:, 1, :].set(A_xy[..., 1].T)
    coord_packed = coord_packed.at[:, 2, :].set(B_xy[..., 0].T)
    coord_packed = coord_packed.at[:, 3, :].set(B_xy[..., 1].T)
    coord_packed = coord_packed.at[:, 4, :].set(C_xy[..., 0].T)
    coord_packed = coord_packed.at[:, 5, :].set(C_xy[..., 1].T)
    coord_packed = coord_packed.at[:, 6, :].set(jnp.asarray(inc_mask, F32).T)
    coord_packed = _pad_cols(coord_packed.reshape(8 * kmax, N), Npad, 0.0)

    # ---- 2) load vector ------------------------------------------------------
    # bounding box of each node's support (bounds_support_jr), packed (8, Npad)
    sup_nodes = cells[sup_cells].reshape(N, -1)          # static indices
    sup_xy = mesh_points[sup_nodes]                      # (N, kmax*3, 2)
    lo = sup_xy.min(axis=1)
    hi = sup_xy.max(axis=1)
    bbox = jnp.zeros((8, N), F32)
    bbox = bbox.at[0].set(lo[:, 0]).at[1].set(hi[:, 0])
    bbox = bbox.at[2].set(lo[:, 1]).at[3].set(hi[:, 1])
    bbox = _pad_cols(bbox, Npad, 0.0)

    # TODO(synk): torchquad Simpson's exact N -> points-per-dim mapping is not
    # reproduced; a tensor-product composite Simpson rule with Qr odd points
    # per dimension is used instead.
    Qr = opt["load_quad_points_per_dim"]
    QQ = Qr * Qr
    QQpad = max(8, pl.cdiv(QQ, 8) * 8)
    t = np.linspace(0.0, 1.0, Qr)
    w1 = simpson_weights(Qr)
    TX, TY = np.meshgrid(t, t, indexing="xy")            # TX[iy,ix]=t[ix]
    Wq = np.outer(w1, w1) / float((Qr - 1) ** 2)
    quad_np = np.zeros((QQpad, 8), np.float32)
    quad_np[:QQ, 0] = TX.reshape(-1)
    quad_np[:QQ, 1] = TY.reshape(-1)
    quad_np[:QQ, 2] = Wq.reshape(-1)                     # padded rows: zero weight
    quad_tbl = jnp.asarray(quad_np)

    # TODO(synk): boundary-node integrals are still computed (then overwritten
    # by the Dirichlet value below); skipping them needs interior-node packing.
    node_grid = (Npad // TN,)
    smem_spec = pl.BlockSpec((4 * G,), lambda i: (0,),
                             memory_space=pltpu.MemorySpace.SMEM)
    quad_spec = pl.BlockSpec((QQpad, 8), lambda i: (0, 0))
    bbox_spec = pl.BlockSpec((8, TN), lambda i: (0, i))
    coord_spec = pl.BlockSpec((8 * kmax, TN), lambda i: (0, i))

    integrals = pl.pallas_call(
        functools.partial(_load_kernel, kmax=kmax, num_gauss=G),
        out_shape=jax.ShapeDtypeStruct((1, Npad), F32),
        grid=node_grid,
        in_specs=[smem_spec, quad_spec, bbox_spec, coord_spec],
        out_specs=pl.BlockSpec((1, TN), lambda i: (0, i)),
        compiler_params=cparams(dimension_semantics=("parallel",)),
    )(gauss_params, quad_tbl, bbox, coord_packed)
    integrals = integrals.reshape(Npad)[:N]

    # boundary nodes get the exact Dirichlet value (BCfn / u_true_exact_2d)
    bc_xy = mesh_points[bc_nodes]
    u_bc = jnp.zeros((bc_nodes.shape[0],), F32)
    for g in range(G):
        u_bc = u_bc + jnp.exp(
            -(bc_xy[:, 0] - centers[g, 0]) ** 2 / scales[g, 0] ** 2
            - (bc_xy[:, 1] - centers[g, 1]) ** 2 / scales[g, 1] ** 2)
    RHS = integrals.at[bc_nodes].set(u_bc)[:, None]               # (N, 1)

    # ---- 3) linear solve -----------------------------------------------------
    # TODO(synk): dense LU solve has no clean single-Pallas-kernel equivalent;
    # kept as plain-JAX jnp.linalg.solve (f32; reference mixes f64).
    coeffs = jnp.linalg.solve(A, RHS)                             # (N, 1)

    # ---- 4) evaluate FEM solution on the eval grid ---------------------------
    Qe = opt["eval_quad_points"]
    E = Qe * Qe
    if E <= 256:
        Epad = max(8, pl.cdiv(E, 8) * 8)
        TE = Epad
    else:
        TE = 256
        Epad = pl.cdiv(E, TE) * TE
    xv = np.linspace(0.0, 1.0, Qe)
    X, Y = np.meshgrid(xv, xv)
    eval_grid = np.reshape(np.array([X, Y]), [2, E]).astype(np.float32)
    ex_np = np.zeros((Epad, 8), np.float32)
    ex_np[:E, 0] = eval_grid[0]
    ex_np[:E, 1] = eval_grid[1]
    ex_packed = jnp.asarray(ex_np)
    # coefficients on sublanes; 128 lanes (only column 0 used) for unmasked
    # stores on the resident accumulator and a clean MXU rhs.
    coef_blk = jnp.zeros((Npad, COEF_LANES), F32).at[:N, 0].set(coeffs.reshape(N))

    sol_pad = pl.pallas_call(
        functools.partial(_soln_kernel, kmax=kmax, tn=TN),
        out_shape=jax.ShapeDtypeStruct((Epad, COEF_LANES), F32),
        grid=(Epad // TE, Npad // TN),
        in_specs=[pl.BlockSpec((TN, COEF_LANES), lambda e, i: (i, 0)),
                  pl.BlockSpec((TE, 8), lambda e, i: (e, 0)),
                  pl.BlockSpec((8 * kmax, TN), lambda e, i: (0, i))],
        out_specs=pl.BlockSpec((TE, COEF_LANES), lambda e, i: (e, 0)),
        compiler_params=cparams(dimension_semantics=("parallel", "arbitrary")),
    )(coef_blk, ex_packed, coord_packed)
    sol = sol_pad[:E, 0]

    return coeffs, mesh_points, sol


# ----------------------------------------------------------------------------
if __name__ == "__main__":
    n = 5                               # mesh_dims = (5, 5) -> 25 nodes
    opt = {
        "mesh_dims": (n, n),
        "eval_quad_points": 8,          # eval grid: 64 points
        "load_quad_points_per_dim": 5,  # ~ load_quad_points = 25
        "loss_type": "pde_loss",
    }
    coords0, cells, bc_nodes = build_unit_square_mesh(n)
    a_idx, b_idx, c_idx, inc_mask, sup_cells, kmax = node_incidence(cells, n * n)
    mesh_static = (coords0, cells, bc_nodes, a_idx, b_idx, c_idx, inc_mask, sup_cells, kmax)

    # deterministic "data": slightly perturbed interior nodes
    key = jax.random.PRNGKey(0)
    pert = 0.05 * (1.0 / (n - 1)) * jax.random.uniform(key, (n * n, 2), minval=-1.0, maxval=1.0)
    interior = np.ones((n * n, 1), np.float32)
    interior[bc_nodes] = 0.0
    mesh_points = jnp.asarray(coords0) + jnp.asarray(interior) * pert      # (25, 2) f32

    # deterministic pde_params: 2 Gaussian sources
    centers = jnp.asarray(np.array([[0.3, 0.4], [0.7, 0.6]], np.float32))  # (2, 2)
    scales = jnp.asarray(np.array([[0.20, 0.25], [0.25, 0.20]], np.float32))

    coeffs, ml_coords, sol = fixed_mesh_2d_forward(
        mesh_points, centers, scales, opt, mesh_static, loss_type=opt["loss_type"])
    jax.block_until_ready((coeffs, ml_coords, sol))

    assert coeffs.shape == (n * n, 1)
    assert ml_coords.shape == (n * n, 2)
    assert sol.shape == (opt["eval_quad_points"] ** 2,)
    assert bool(jnp.all(jnp.isfinite(coeffs))) and bool(jnp.all(jnp.isfinite(sol)))
    print("KERNEL_OK")
</pallas_src>

<mosaic_0001>
module attributes {stable_mosaic.version = 11 : i64} {
  func.func @_stiffness_kernel(%arg0: i32, %arg1: memref<8x512xf32, #tpu.memory_space<vmem>>, %arg2: memref<8x512xf32, #tpu.memory_space<vmem>>) attributes {dimension_semantics = [#tpu.dimension_semantics<parallel>], iteration_bounds = array<i64: 1>, scalar_prefetch = 0 : i64, scratch_operands = 0 : i64, tpu.core_type = #tpu.core_type<tc>, window_params = [{transform_indices = @transform_0, window_bounds = array<i64: 8, 512>}, {transform_indices = @transform_1, window_bounds = array<i64: 8, 512>}]} {
    %c0 = arith.constant 0 : index
    %c0_0 = arith.constant 0 : index
    %0 = vector.load %arg1[%c0, %c0_0] : memref<8x512xf32, #tpu.memory_space<vmem>>, vector<1x512xf32>
    %c1 = arith.constant 1 : index
    %c0_1 = arith.constant 0 : index
    %1 = vector.load %arg1[%c1, %c0_1] : memref<8x512xf32, #tpu.memory_space<vmem>>, vector<1x512xf32>
    %c2 = arith.constant 2 : index
    %c0_2 = arith.constant 0 : index
    %2 = vector.load %arg1[%c2, %c0_2] : memref<8x512xf32, #tpu.memory_space<vmem>>, vector<1x512xf32>
    %c3 = arith.constant 3 : index
    %c0_3 = arith.constant 0 : index
    %3 = vector.load %arg1[%c3, %c0_3] : memref<8x512xf32, #tpu.memory_space<vmem>>, vector<1x512xf32>
    %c4 = arith.constant 4 : index
    %c0_4 = arith.constant 0 : index
    %4 = vector.load %arg1[%c4, %c0_4] : memref<8x512xf32, #tpu.memory_space<vmem>>, vector<1x512xf32>
    %c5 = arith.constant 5 : index
    %c0_5 = arith.constant 0 : index
    %5 = vector.load %arg1[%c5, %c0_5] : memref<8x512xf32, #tpu.memory_space<vmem>>, vector<1x512xf32>
    %6 = arith.subf %1, %0 : vector<1x512xf32>
    %7 = arith.subf %5, %3 : vector<1x512xf32>
    %8 = arith.mulf %6, %7 : vector<1x512xf32>
    %9 = arith.subf %2, %0 : vector<1x512xf32>
    %10 = arith.subf %4, %3 : vector<1x512xf32>
    %11 = arith.mulf %9, %10 : vector<1x512xf32>
    %12 = arith.subf %8, %11 : vector<1x512xf32>
    %13 = math.absf %12 : vector<1x512xf32>
    %cst = arith.constant 5.000000e-01 : f32
    %14 = vector.broadcast %cst : f32 to vector<1x512xf32>
    %15 = arith.divf %14, %13 : vector<1x512xf32>
    %16 = arith.subf %4, %5 : vector<1x512xf32>
    %17 = arith.subf %2, %1 : vector<1x512xf32>
    %18 = arith.subf %5, %3 : vector<1x512xf32>
    %19 = arith.subf %0, %2 : vector<1x512xf32>
    %20 = arith.subf %3, %4 : vector<1x512xf32>
    %21 = arith.subf %1, %0 : vector<1x512xf32>
    %22 = arith.mulf %16, %16 : vector<1x512xf32>
    %23 = arith.mulf %17, %17 : vector<1x512xf32>
    %24 = arith.addf %22, %23 : vector<1x512xf32>
    %25 = arith.mulf %24, %15 : vector<1x512xf32>
    %c0_6 = arith.constant 0 : index
    %c0_7 = arith.constant 0 : index
    %26 = vector.load %arg2[%c0_6, %c0_7] : memref<8x512xf32, #tpu.memory_space<vmem>>, vector<1x512xf32>
    tpu.vector_store %arg2[%c0_6, %c0_7], %25 {strides = array<i32>} : memref<8x512xf32, #tpu.memory_space<vmem>>, vector<1x512xf32>,
    %27 = arith.mulf %18, %18 : vector<1x512xf32>
    %28 = arith.mulf %19, %19 : vector<1x512xf32>
    %29 = arith.addf %27, %28 : vector<1x512xf32>
    %30 = arith.mulf %29, %15 : vector<1x512xf32>
    %c1_8 = arith.constant 1 : index
    %c0_9 = arith.constant 0 : index
    %31 = vector.load %arg2[%c1_8, %c0_9] : memref<8x512xf32, #tpu.memory_space<vmem>>, vector<1x512xf32>
    tpu.vector_store %arg2[%c1_8, %c0_9], %30 {strides = array<i32>} : memref<8x512xf32, #tpu.memory_space<vmem>>, vector<1x512xf32>,
    %32 = arith.mulf %20, %20 : vector<1x512xf32>
    %33 = arith.mulf %21, %21 : vector<1x512xf32>
    %34 = arith.addf %32, %33 : vector<1x512xf32>
    %35 = arith.mulf %34, %15 : vector<1x512xf32>
    %c2_10 = arith.constant 2 : index
    %c0_11 = arith.constant 0 : index
    %36 = vector.load %arg2[%c2_10, %c0_11] : memref<8x512xf32, #tpu.memory_space<vmem>>, vector<1x512xf32>
    tpu.vector_store %arg2[%c2_10, %c0_11], %35 {strides = array<i32>} : memref<8x512xf32, #tpu.memory_space<vmem>>, vector<1x512xf32>,
    %37 = arith.mulf %16, %18 : vector<1x512xf32>
    %38 = arith.mulf %17, %19 : vector<1x512xf32>
    %39 = arith.addf %37, %38 : vector<1x512xf32>
    %40 = arith.mulf %39, %15 : vector<1x512xf32>
    %c3_12 = arith.constant 3 : index
    %c0_13 = arith.constant 0 : index
    %41 = vector.load %arg2[%c3_12, %c0_13] : memref<8x512xf32, #tpu.memory_space<vmem>>, vector<1x512xf32>
    tpu.vector_store %arg2[%c3_12, %c0_13], %40 {strides = array<i32>} : memref<8x512xf32, #tpu.memory_space<vmem>>, vector<1x512xf32>,
    %42 = arith.mulf %18, %20 : vector<1x512xf32>
    %43 = arith.mulf %19, %21 : vector<1x512xf32>
    %44 = arith.addf %42, %43 : vector<1x512xf32>
    %45 = arith.mulf %44, %15 : vector<1x512xf32>
    %c4_14 = arith.constant 4 : index
    %c0_15 = arith.constant 0 : index
    %46 = vector.load %arg2[%c4_14, %c0_15] : memref<8x512xf32, #tpu.memory_space<vmem>>, vector<1x512xf32>
    tpu.vector_store %arg2[%c4_14, %c0_15], %45 {strides = array<i32>} : memref<8x512xf32, #tpu.memory_space<vmem>>, vector<1x512xf32>,
    %47 = arith.mulf %20, %16 : vector<1x512xf32>
    %48 = arith.mulf %21, %17 : vector<1x512xf32>
    %49 = arith.addf %47, %48 : vector<1x512xf32>
    %50 = arith.mulf %49, %15 : vector<1x512xf32>
    %c5_16 = arith.constant 5 : index
    %c0_17 = arith.constant 0 : index
    %51 = vector.load %arg2[%c5_16, %c0_17] : memref<8x512xf32, #tpu.memory_space<vmem>>, vector<1x512xf32>
    tpu.vector_store %arg2[%c5_16, %c0_17], %50 {strides = array<i32>} : memref<8x512xf32, #tpu.memory_space<vmem>>, vector<1x512xf32>,
    return
  }
  func.func @transform_0(%arg0: i32) -> (i32, i32) {
    %c0_i32 = arith.constant 0 : i32
    %c0_i32_0 = arith.constant 0 : i32
    return %c0_i32, %arg0 : i32, i32
  }
  func.func @transform_1(%arg0: i32) -> (i32, i32) {
    %c0_i32 = arith.constant 0 : i32
    %c0_i32_0 = arith.constant 0 : i32
    return %c0_i32, %arg0 : i32, i32
  }
}

</mosaic_0001>

<bundles_post_ra>
// kernel: tpu_custom_call.1
= control target key start
LH: loop header
LB: loop body
LE: loop exit
PB: predicated region body
PF: predicated region fallthrough
CT: control target
= control target key end

     0   :  { %6 = vsyncpa [#allocation3], 0  ;;  %s219_s0 = inlined_call_operand.hbm [shape: f32[8,512], index: 0, kind: input, shape index: {}]   ;;  %s220_s1 = inlined_call_operand.hbm [shape: f32[8,512], index: 1, kind: output, shape index: {}]  }
   0x1   :  { %7 = vsyncpa [#allocation4], 0  ;;  %s13_s8 = sshll.u32 %s219_s0, 4  ;;  %s179_s9 = smov [#allocation2]   ;;  %s14_s8 = int_to_ptr.hbm [resolvable:$true] %s13_s8 }
   0x2   :  { %s15_s10 = sshll.u32 %s179_s9, 4  ;;  %s16_s10 = int_to_ptr.vmem [resolvable:$true] %s15_s10 }
   0x3   :  { %18 = dma.hbm_to_vmem [thread:$0]  %s14_s8, 512, %s16_s10, [#allocation3]  }
   0x4   :  { %175 = dma.done.wait [#allocation3], 512  }
   0x5   :  { %176 = vsyncadd [#allocation3], 4294966784  ;;  %v23_v0 = vld [vmem:[#allocation2] ss:$8 sm:$0xf]  ;;  %v65_v36 = vlaneseq  ;;  %s180_s0 = smov [#allocation5]  }
   0x6   :  { %v25_v1 = vld [vmem:[#allocation2 + $0x1] ss:$8 sm:$0xf]  ;;  %v27_v2 = vld [vmem:[#allocation2 + $0x2] ss:$8 sm:$0xf] }
   0x7   :  { %v29_v3 = vld [vmem:[#allocation2 + $0x3] ss:$8 sm:$0xf]  ;;  %v34_v4 = vsub.f32 %v25_v1, %v23_v0  ;;  %v31_v5 = vld [vmem:[#allocation2 + $0x4] ss:$8 sm:$0xf]  ;;  %v37_v7 = vsub.f32 %v27_v2, %v23_v0  ;;  %v58_v15 = vsub.f32 %v27_v2, %v25_v1  ;;  %v59_v16 = vsub.f32 %v23_v0, %v27_v2 }
   0x8   :  { %v33_v6 = vld [vmem:[#allocation2 + $0x5] ss:$8 sm:$0xf]  ;;  %v38_v9 = vsub.f32 %v31_v5, %v29_v3  ;;  %v60_v19 = vsub.f32 %v29_v3, %v31_v5  ;;  %vm200_vm4 = vcmp.lt.s32.totalorder %v65_v36, 512  ;;  %s111_s11 = sshll.u32 %s180_s0, 4  ;;  %s113_s14 = sshll.u32 %s220_s1, 4  ;;  %s112_s11 = int_to_ptr.vmem [resolvable:$true] %s111_s11  ;;  %s114_s14 = int_to_ptr.hbm [resolvable:$true] %s113_s14 }
   0x9   :  { %v35_v8 = vsub.f32 %v33_v6, %v29_v3  ;;  %v57_v18 = vsub.f32 %v31_v5, %v33_v6  ;;  %v62_v22 = vmul.f32 %v58_v15, %v58_v15  ;;  %v72_v23 = vmul.f32 %v59_v16, %v59_v16 }
   0xa   :  { %v39_v11 = vmul.f32 %v38_v9, %v37_v7  ;;  %v79_v24 = vmul.f32 %v34_v4, %v34_v4  ;;  %v78_v28 = vmul.f32 %v60_v19, %v60_v19  ;;  %v86_v32 = vmul.f32 %v59_v16, %v58_v15 }
   0xb   :  { %v36_v10 = vmul.f32 %v35_v8, %v34_v4  ;;  %v61_v26 = vmul.f32 %v57_v18, %v57_v18  ;;  %v71_v27 = vmul.f32 %v35_v8, %v35_v8  ;;  %v85_v31 = vmul.f32 %v57_v18, %v35_v8 }
   0xc   :  { %v92_v34 = vmul.f32 %v60_v19, %v35_v8  ;;  %v93_v35 = vmul.f32 %v59_v16, %v34_v4  ;;  %v99_v37 = vmul.f32 %v60_v19, %v57_v18  ;;  %v100_v38 = vmul.f32 %v58_v15, %v34_v4 }
   0xd   :  { %v40_v12 = vsub.f32 %v36_v10, %v39_v11  ;;  %v63_v40 = vadd.f32 %v62_v22, %v61_v26  ;;  %v73_v41 = vadd.f32 %v72_v23, %v71_v27  ;;  %v80_v42 = vadd.f32 %v79_v24, %v78_v28 }
   0xe   :  { %v87_v44 = vadd.f32 %v86_v32, %v85_v31  ;;  %v94_v46 = vadd.f32 %v93_v35, %v92_v34  ;;  %v101_v48 = vadd.f32 %v100_v38, %v99_v37 }
   0xf   :  { %v41_v13 = vand.u32 2147483647, %v40_v12 }
  0x11   :  { %125 = vrcp.f32 %v41_v13  ;;  %v53_v20 = vand.u32 2147483648, %v41_v13  ;;  %vm47_vm0 = vweird.f32 %v41_v13  ;;  %vm52_vm3 = vcmp.eq.f32.partialorder %v41_v13, 8.507059e+37 }
  0x13   :  { %v54_v30 = vor.u32 1.1754944e-38, %v53_v20 }
  0x17   :  { %v126_v14 = vpop.eup %125 }
  0x18   :  { %v43_v17 = vmul.f32 %v126_v14, %v41_v13  ;;  %vm48_vm1 = vweird.f32 %v126_v14 }
  0x19   :  { %vm194_vm2 = vmor %vm47_vm0, %vm48_vm1 }
  0x1a   :  { %v44_v21 = vsub.f32 1.0, %v43_v17 }
  0x1c   :  { %v45_v25 = vmul.f32 %v126_v14, %v44_v21 }
  0x1e   :  { %v46_v33 = vadd.f32 %v126_v14, %v45_v25 }
  0x20   :  { %v50_v39 = vsel %vm194_vm2, %v126_v14, %v46_v33 }
  0x21   :  { %v55_v43 = vsel %vm52_vm3, %v54_v30, %v50_v39 }
  0x22   :  { %v56_v45 = vmul.f32 0.5, %v55_v43 }
  0x24   :  { %v64_v49 = vmul.f32 %v63_v40, %v56_v45  ;;  %v74_v50 = vmul.f32 %v73_v41, %v56_v45  ;;  %v81_v51 = vmul.f32 %v80_v42, %v56_v45  ;;  %v88_v52 = vmul.f32 %v87_v44, %v56_v45 }
  0x25   :  { %v95_v53 = vmul.f32 %v94_v46, %v56_v45  ;;  %v102_v54 = vmul.f32 %v101_v48, %v56_v45 }
  0x26   :  { %69 = vst.msk [vmem:[#allocation5] ss:$8 sm:$0xf] %vm200_vm4, %v64_v49 }
  0x27   :  { %76 = vst.msk [vmem:[#allocation5 + $0x1] ss:$8 sm:$0xf] %vm200_vm4, %v74_v50 }
  0x28   :  { %83 = vst.msk [vmem:[#allocation5 + $0x2] ss:$8 sm:$0xf] %vm200_vm4, %v81_v51 }
  0x29   :  { %90 = vst.msk [vmem:[#allocation5 + $0x3] ss:$8 sm:$0xf] %vm200_vm4, %v88_v52 }
  0x2a   :  { %97 = vst.msk [vmem:[#allocation5 + $0x4] ss:$8 sm:$0xf] %vm200_vm4, %v95_v53 }
  0x2b   :  { %104 = vst.msk [vmem:[#allocation5 + $0x5] ss:$8 sm:$0xf] %vm200_vm4, %v102_v54 }
  0x2c   :  { %116 = dma.vmem_to_hbm [thread:$0]  %s112_s11, 512, %s114_s14, [#allocation4]  }
  0x2d   :  { %177 = dma.done.wait [#allocation4], 512  }
  0x2e   :  { %178 = vsyncadd [#allocation4], 4294966784 }
  0x2f   :  { %121 = vsyncpa [#allocation3], 1 }
  0x30   :  { %122 = vsyncpa [#allocation4], 1 }

</bundles_post_ra>
